<compile_context>
chip_gen: v6e
topology: v6e:2x2x1
jax: 0.10.0
libtpu: 0.0.40
codegen_flags: <defaults>
</compile_context>

<pallas_src>
import jax
import jax.numpy as jnp
from jax.experimental import pallas as pl
from jax.experimental.pallas import tpu as pltpu

CLASSES = 7
FEATURE_DIM = 54
ACTION_DIM = FEATURE_DIM + CLASSES          # 61
NN_FC_DENSITY = 256
NN_HIDDEN_LAYERS = 3
STATE_DIM = FEATURE_DIM * 2                 # 108

K_PAD = 128                                 # padded input feature dim (lanes)
N_PAD = 128                                 # padded output head dim (lanes)


def _round_up(x, m):
    return (x + m - 1) // m * m


def _mlp_kernel(x_ref,
                w1_ref, b1_ref,
                w2_ref, b2_ref,
                w3_ref, b3_ref,
                wo_ref, bo_ref,
                o_ref):
    wdt = w1_ref.dtype  # compute dtype for the MXU (f32 or bf16 weights)

    # Hidden layer 1: (tb, 128) @ (128, 256) + (1, 256) -> relu   (f32 acc)
    h = jnp.dot(x_ref[...].astype(wdt), w1_ref[...],
                preferred_element_type=jnp.float32)
    h = jnp.maximum(h + b1_ref[...], 0.0)
    # Hidden layer 2
    h = jnp.dot(h.astype(wdt), w2_ref[...], preferred_element_type=jnp.float32)
    h = jnp.maximum(h + b2_ref[...], 0.0)
    # Hidden layer 3
    h = jnp.dot(h.astype(wdt), w3_ref[...], preferred_element_type=jnp.float32)
    h = jnp.maximum(h + b3_ref[...], 0.0)
    # Output head (no activation), lane-padded to 128
    out = jnp.dot(h.astype(wdt), wo_ref[...], preferred_element_type=jnp.float32)
    o_ref[...] = (out + bo_ref[...]).astype(o_ref.dtype)


def net_forward(x, params, *, tile_b=512):
    """x: (B, STATE_DIM) f32. params: padded/transposed weights (see init_params).

    Returns (B, ACTION_DIM) f32.
    """
    B, in_dim = x.shape
    assert in_dim == STATE_DIM

    # Batch tile: multiple of 8 sublanes; pad B up to a multiple of the tile.
    tb = min(tile_b, _round_up(max(B, 1), 8))
    B_pad = _round_up(B, tb)
    grid = (B_pad // tb,)

    # Zero-pad the input to (B_pad, 128): lane-aligned K, grid-aligned batch.
    x_p = jnp.zeros((B_pad, K_PAD), jnp.float32).at[:B, :STATE_DIM].set(
        x.astype(jnp.float32))

    weights_and_biases = (
        params["w1"], params["b1"],
        params["w2"], params["b2"],
        params["w3"], params["b3"],
        params["wo"], params["bo"],
    )
    args = (x_p,) + weights_and_biases

    # x is tiled over the batch grid; parameters are VMEM-resident
    # (constant block index across the grid).  Note: no late-binding lambdas —
    # index maps are built with the rank captured eagerly.
    in_specs = [pl.BlockSpec((tb, K_PAD), lambda i: (i, 0))]
    for p in weights_and_biases:
        in_specs.append(
            pl.BlockSpec(p.shape, lambda i, _nd=p.ndim: (0,) * _nd))
    out_specs = pl.BlockSpec((tb, N_PAD), lambda i: (i, 0))

    flops = 2 * B_pad * (K_PAD * NN_FC_DENSITY
                         + NN_FC_DENSITY * NN_FC_DENSITY * (NN_HIDDEN_LAYERS - 1)
                         + NN_FC_DENSITY * N_PAD)
    bytes_accessed = (x_p.size * x_p.dtype.itemsize
                      + sum(int(p.size) * p.dtype.itemsize
                            for p in weights_and_biases)
                      + B_pad * N_PAD * 4)

    out = pl.pallas_call(
        _mlp_kernel,
        out_shape=jax.ShapeDtypeStruct((B_pad, N_PAD), jnp.float32),
        grid=grid,
        in_specs=in_specs,
        out_specs=out_specs,
        compiler_params=pltpu.CompilerParams(
            dimension_semantics=("parallel",)),
        cost_estimate=pl.CostEstimate(
            flops=flops, transcendentals=0, bytes_accessed=bytes_accessed),
    )(*args)

    return out[:B, :ACTION_DIM]


def init_params(key):
    """Deterministic init mimicking torch.nn.Linear.

    Weights are stored transposed to (in_features, out_features) and
    zero-padded to lane-aligned shapes:
      w1: (128, 256)  (rows 108..127 zero)     b1: (1, 256)
      w2: (256, 256)                           b2: (1, 256)
      w3: (256, 256)                           b3: (1, 256)
      wo: (256, 128)  (cols 61..127 zero)      bo: (1, 128) (cols 61..127 zero)
    """
    dims = [STATE_DIM] + [NN_FC_DENSITY] * NN_HIDDEN_LAYERS + [ACTION_DIM]
    pad_in = [K_PAD] + [NN_FC_DENSITY] * NN_HIDDEN_LAYERS
    pad_out = [NN_FC_DENSITY] * NN_HIDDEN_LAYERS + [N_PAD]
    names = ["1", "2", "3", "o"]
    params = {}
    for i, name in enumerate(names):
        fan_in, fan_out = dims[i], dims[i + 1]
        key, kw, kb = jax.random.split(key, 3)
        bound = 1.0 / jnp.sqrt(float(fan_in))
        w = jax.random.uniform(kw, (fan_in, fan_out), jnp.float32, -bound, bound)
        b = jax.random.uniform(kb, (1, fan_out), jnp.float32, -bound, bound)
        params["w" + name] = (
            jnp.zeros((pad_in[i], pad_out[i]), jnp.float32)
            .at[:fan_in, :fan_out].set(w))
        params["b" + name] = (
            jnp.zeros((1, pad_out[i]), jnp.float32).at[:, :fan_out].set(b))
    return params


def cast_weights(params, dtype):
    """Cast weight matrices (not biases) to `dtype` (e.g. bf16 for v6e/v7x MXU)."""
    return {k: (v.astype(dtype) if k.startswith("w") else v)
            for k, v in params.items()}


def _ref_forward(x, p):
    h = jnp.pad(x.astype(jnp.float32), ((0, 0), (0, K_PAD - STATE_DIM)))
    for n in ["1", "2", "3"]:
        h = jnp.maximum(h @ p["w" + n].astype(jnp.float32) + p["b" + n], 0.0)
    return (h @ p["wo"].astype(jnp.float32) + p["bo"])[:, :ACTION_DIM]


if __name__ == "__main__":
    key = jax.random.PRNGKey(0)
    kx, kx2, kp = jax.random.split(key, 3)
    params = init_params(kp)

    # --- small batch, f32 weights (single grid step) ---
    B = 8
    x = jax.random.normal(kx, (B, STATE_DIM), jnp.float32)
    out = jax.block_until_ready(net_forward(x, params))
    ref = _ref_forward(x, params)
    assert out.shape == (B, ACTION_DIM)
    assert jnp.allclose(out, ref, atol=1e-4, rtol=1e-4)

    # --- batch not a multiple of the tile, multi-step grid, f32 weights ---
    B2 = 200
    x2 = jax.random.normal(kx2, (B2, STATE_DIM), jnp.float32)
    out2 = jax.block_until_ready(net_forward(x2, params, tile_b=64))
    ref2 = _ref_forward(x2, params)
    assert out2.shape == (B2, ACTION_DIM)
    assert jnp.allclose(out2, ref2, atol=1e-4, rtol=1e-4)

    # --- bf16 weights (v6e/v7x fast path), f32 accumulation, loose tolerance ---
    params_bf16 = cast_weights(params, jnp.bfloat16)
    out_bf16 = jax.block_until_ready(net_forward(x, params_bf16))
    assert out_bf16.shape == (B, ACTION_DIM)
    assert jnp.allclose(out_bf16, ref, atol=5e-2, rtol=5e-2)

    print("KERNEL_OK")
</pallas_src>

<mosaic_0001>
module attributes {stable_mosaic.version = 11 : i64} {
  func.func @_mlp_kernel(%arg0: i32, %arg1: memref<8x128xf32, #tpu.memory_space<vmem>>, %arg2: memref<128x256xf32, #tpu.memory_space<vmem>>, %arg3: memref<1x256xf32, #tpu.memory_space<vmem>>, %arg4: memref<256x256xf32, #tpu.memory_space<vmem>>, %arg5: memref<1x256xf32, #tpu.memory_space<vmem>>, %arg6: memref<256x256xf32, #tpu.memory_space<vmem>>, %arg7: memref<1x256xf32, #tpu.memory_space<vmem>>, %arg8: memref<256x128xf32, #tpu.memory_space<vmem>>, %arg9: memref<1x128xf32, #tpu.memory_space<vmem>>, %arg10: memref<8x128xf32, #tpu.memory_space<vmem>>) attributes {dimension_semantics = [#tpu.dimension_semantics<parallel>], iteration_bounds = array<i64: 1>, scalar_prefetch = 0 : i64, scratch_operands = 0 : i64, tpu.core_type = #tpu.core_type<tc>, window_params = [{transform_indices = @transform_0, window_bounds = array<i64: 8, 128>}, {pipeline_mode = #tpu.pipeline_mode<synchronous>, transform_indices = @transform_1, window_bounds = array<i64: 128, 256>}, {pipeline_mode = #tpu.pipeline_mode<synchronous>, transform_indices = @transform_2, window_bounds = array<i64: 1, 256>}, {pipeline_mode = #tpu.pipeline_mode<synchronous>, transform_indices = @transform_3, window_bounds = array<i64: 256, 256>}, {pipeline_mode = #tpu.pipeline_mode<synchronous>, transform_indices = @transform_4, window_bounds = array<i64: 1, 256>}, {pipeline_mode = #tpu.pipeline_mode<synchronous>, transform_indices = @transform_5, window_bounds = array<i64: 256, 256>}, {pipeline_mode = #tpu.pipeline_mode<synchronous>, transform_indices = @transform_6, window_bounds = array<i64: 1, 256>}, {pipeline_mode = #tpu.pipeline_mode<synchronous>, transform_indices = @transform_7, window_bounds = array<i64: 256, 128>}, {pipeline_mode = #tpu.pipeline_mode<synchronous>, transform_indices = @transform_8, window_bounds = array<i64: 1, 128>}, {transform_indices = @transform_9, window_bounds = array<i64: 8, 128>}]} {
    %c0 = arith.constant 0 : index
    %c0_0 = arith.constant 0 : index
    %0 = vector.load %arg1[%c0, %c0_0] : memref<8x128xf32, #tpu.memory_space<vmem>>, vector<8x128xf32>
    %c0_1 = arith.constant 0 : index
    %c0_2 = arith.constant 0 : index
    %1 = vector.load %arg2[%c0_1, %c0_2] : memref<128x256xf32, #tpu.memory_space<vmem>>, vector<128x256xf32>
    %cst = arith.constant dense<0.000000e+00> : vector<8x256xf32>
    %2 = tpu.matmul %0, %1, %cst {dimension_numbers = #tpu.dot_dimension_numbers<[1], [0], [0], [1], [0, 0, 1, 1], [], []>} : vector<8x128xf32>, vector<128x256xf32>, vector<8x256xf32> -> vector<8x256xf32>
    %c0_3 = arith.constant 0 : index
    %c0_4 = arith.constant 0 : index
    %3 = vector.load %arg3[%c0_3, %c0_4] : memref<1x256xf32, #tpu.memory_space<vmem>>, vector<1x256xf32>
    %4 = vector.broadcast %3 : vector<1x256xf32> to vector<8x256xf32>
    %5 = arith.addf %2, %4 : vector<8x256xf32>
    %cst_5 = arith.constant 0.000000e+00 : f32
    %6 = vector.broadcast %cst_5 : f32 to vector<8x256xf32>
    %7 = arith.maximumf %5, %6 : vector<8x256xf32>
    %c0_6 = arith.constant 0 : index
    %c0_7 = arith.constant 0 : index
    %8 = vector.load %arg4[%c0_6, %c0_7] : memref<256x256xf32, #tpu.memory_space<vmem>>, vector<256x256xf32>
    %cst_8 = arith.constant dense<0.000000e+00> : vector<8x256xf32>
    %9 = tpu.matmul %7, %8, %cst_8 {dimension_numbers = #tpu.dot_dimension_numbers<[1], [0], [0], [1], [0, 0, 1, 1], [], []>} : vector<8x256xf32>, vector<256x256xf32>, vector<8x256xf32> -> vector<8x256xf32>
    %c0_9 = arith.constant 0 : index
    %c0_10 = arith.constant 0 : index
    %10 = vector.load %arg5[%c0_9, %c0_10] : memref<1x256xf32, #tpu.memory_space<vmem>>, vector<1x256xf32>
    %11 = vector.broadcast %10 : vector<1x256xf32> to vector<8x256xf32>
    %12 = arith.addf %9, %11 : vector<8x256xf32>
    %cst_11 = arith.constant 0.000000e+00 : f32
    %13 = vector.broadcast %cst_11 : f32 to vector<8x256xf32>
    %14 = arith.maximumf %12, %13 : vector<8x256xf32>
    %c0_12 = arith.constant 0 : index
    %c0_13 = arith.constant 0 : index
    %15 = vector.load %arg6[%c0_12, %c0_13] : memref<256x256xf32, #tpu.memory_space<vmem>>, vector<256x256xf32>
    %cst_14 = arith.constant dense<0.000000e+00> : vector<8x256xf32>
    %16 = tpu.matmul %14, %15, %cst_14 {dimension_numbers = #tpu.dot_dimension_numbers<[1], [0], [0], [1], [0, 0, 1, 1], [], []>} : vector<8x256xf32>, vector<256x256xf32>, vector<8x256xf32> -> vector<8x256xf32>
    %c0_15 = arith.constant 0 : index
    %c0_16 = arith.constant 0 : index
    %17 = vector.load %arg7[%c0_15, %c0_16] : memref<1x256xf32, #tpu.memory_space<vmem>>, vector<1x256xf32>
    %18 = vector.broadcast %17 : vector<1x256xf32> to vector<8x256xf32>
    %19 = arith.addf %16, %18 : vector<8x256xf32>
    %cst_17 = arith.constant 0.000000e+00 : f32
    %20 = vector.broadcast %cst_17 : f32 to vector<8x256xf32>
    %21 = arith.maximumf %19, %20 : vector<8x256xf32>
    %c0_18 = arith.constant 0 : index
    %c0_19 = arith.constant 0 : index
    %22 = vector.load %arg8[%c0_18, %c0_19] : memref<256x128xf32, #tpu.memory_space<vmem>>, vector<256x128xf32>
    %cst_20 = arith.constant dense<0.000000e+00> : vector<8x128xf32>
    %23 = tpu.matmul %21, %22, %cst_20 {dimension_numbers = #tpu.dot_dimension_numbers<[1], [0], [0], [1], [0, 0, 1, 1], [], []>} : vector<8x256xf32>, vector<256x128xf32>, vector<8x128xf32> -> vector<8x128xf32>
    %c0_21 = arith.constant 0 : index
    %c0_22 = arith.constant 0 : index
    %24 = vector.load %arg9[%c0_21, %c0_22] : memref<1x128xf32, #tpu.memory_space<vmem>>, vector<1x128xf32>
    %25 = vector.broadcast %24 : vector<1x128xf32> to vector<8x128xf32>
    %26 = arith.addf %23, %25 : vector<8x128xf32>
    %c0_23 = arith.constant 0 : index
    %c0_24 = arith.constant 0 : index
    %27 = vector.load %arg10[%c0_23, %c0_24] : memref<8x128xf32, #tpu.memory_space<vmem>>, vector<8x128xf32>
    tpu.vector_store %arg10[%c0_23, %c0_24], %26 {strides = array<i32>} : memref<8x128xf32, #tpu.memory_space<vmem>>, vector<8x128xf32>,
    return
  }
  func.func @transform_0(%arg0: i32) -> (i32, i32) {
    %c0_i32 = arith.constant 0 : i32
    %c0_i32_0 = arith.constant 0 : i32
    return %arg0, %c0_i32 : i32, i32
  }
  func.func @transform_1(%arg0: i32) -> (i32, i32) {
    %c0_i32 = arith.constant 0 : i32
    %c0_i32_0 = arith.constant 0 : i32
    %c0_i32_1 = arith.constant 0 : i32
    return %c0_i32, %c0_i32_0 : i32, i32
  }
  func.func @transform_2(%arg0: i32) -> (i32, i32) {
    %c0_i32 = arith.constant 0 : i32
    %c0_i32_0 = arith.constant 0 : i32
    %c0_i32_1 = arith.constant 0 : i32
    return %c0_i32, %c0_i32_0 : i32, i32
  }
  func.func @transform_3(%arg0: i32) -> (i32, i32) {
    %c0_i32 = arith.constant 0 : i32
    %c0_i32_0 = arith.constant 0 : i32
    %c0_i32_1 = arith.constant 0 : i32
    return %c0_i32, %c0_i32_0 : i32, i32
  }
  func.func @transform_4(%arg0: i32) -> (i32, i32) {
    %c0_i32 = arith.constant 0 : i32
    %c0_i32_0 = arith.constant 0 : i32
    %c0_i32_1 = arith.constant 0 : i32
    return %c0_i32, %c0_i32_0 : i32, i32
  }
  func.func @transform_5(%arg0: i32) -> (i32, i32) {
    %c0_i32 = arith.constant 0 : i32
    %c0_i32_0 = arith.constant 0 : i32
    %c0_i32_1 = arith.constant 0 : i32
    return %c0_i32, %c0_i32_0 : i32, i32
  }
  func.func @transform_6(%arg0: i32) -> (i32, i32) {
    %c0_i32 = arith.constant 0 : i32
    %c0_i32_0 = arith.constant 0 : i32
    %c0_i32_1 = arith.constant 0 : i32
    return %c0_i32, %c0_i32_0 : i32, i32
  }
  func.func @transform_7(%arg0: i32) -> (i32, i32) {
    %c0_i32 = arith.constant 0 : i32
    %c0_i32_0 = arith.constant 0 : i32
    %c0_i32_1 = arith.constant 0 : i32
    return %c0_i32, %c0_i32_0 : i32, i32
  }
  func.func @transform_8(%arg0: i32) -> (i32, i32) {
    %c0_i32 = arith.constant 0 : i32
    %c0_i32_0 = arith.constant 0 : i32
    %c0_i32_1 = arith.constant 0 : i32
    return %c0_i32, %c0_i32_0 : i32, i32
  }
  func.func @transform_9(%arg0: i32) -> (i32, i32) {
    %c0_i32 = arith.constant 0 : i32
    %c0_i32_0 = arith.constant 0 : i32
    return %arg0, %c0_i32 : i32, i32
  }
}

</mosaic_0001>

<bundles_post_ra>
// kernel: tpu_custom_call.1
= control target key start
LH: loop header
LB: loop body
LE: loop exit
PB: predicated region body
PF: predicated region fallthrough
CT: control target
= control target key end

     0   :  { %14 = vsyncpa [#allocation3], 0  ;;  %s927_s0 = inlined_call_operand.hbm [shape: f32[8,128], index: 0, kind: input, shape index: {}]   ;;  %s928_s1 = inlined_call_operand.hbm [shape: f32[128,256], index: 1, kind: input, shape index: {}]   ;;  %s929_s2 = inlined_call_operand.vmem [shape: f32[1,256], index: 2, kind: input, shape index: {}]   ;;  %s930_s3 = inlined_call_operand.hbm [shape: f32[256,256], index: 3, kind: input, shape index: {}]   ;;  %s931_s4 = inlined_call_operand.vmem [shape: f32[1,256], index: 4, kind: input, shape index: {}]   ;;  %s932_s5 = inlined_call_operand.hbm [shape: f32[256,256], index: 5, kind: input, shape index: {}]   ;;  %s933_s6 = inlined_call_operand.vmem [shape: f32[1,256], index: 6, kind: input, shape index: {}]   ;;  %s934_s7 = inlined_call_operand.hbm [shape: f32[256,128], index: 7, kind: input, shape index: {}]   ;;  %s935_s8 = inlined_call_operand.vmem [shape: f32[1,128], index: 8, kind: input, shape index: {}]   ;;  %s936_s9 = inlined_call_operand.hbm [shape: f32[8,128], index: 9, kind: output, shape index: {}]  }
   0x1   :  { %15 = vsyncpa [#allocation6], 0 }
   0x2   :  { %16 = vsyncpa [#allocation9], 0 }
   0x3   :  { %17 = vsyncpa [#allocation4], 0  ;;  %s817_s30 = smov [#allocation5]  }
   0x4   :  { %s33_s10 = sshll.u32 %s817_s30, 4  ;;  %s34_s10 = int_to_ptr.vmem [resolvable:$true] %s33_s10 }
   0x5   :  { %s697_s11 = scalar_lea.vmem %s34_s10, 4096  ;;  %p702_p1 = scmp.lt.s32.totalorder %s34_s10, %s34_s10 }
   0x6   :  { %p698_p0 = scmp.ne.s32.totalorder %s34_s10, %s697_s11  ;;  %p703_p2 = scmp.lt.s32.totalorder %s697_s11, %s697_s11 }
   0x8   :  { %p704_p3 = por %p703_p2, %p702_p1 }
   0xa   :  { %p705_p4 = pnand %p704_p3, %p698_p0 }
   0xc   :  { %708 = shalt.err (!%p705_p4)
}
   0xd   :  { %s818_s12 = smov 256   ;;  %s819_s13 = smov 16  }
   0xe   :  { %39 = dma.hbm_to_vmem [thread:$0]  %s928_s1, 4096, %s34_s10, [#allocation6], %s818_s12, %s818_s12, %s819_s13  }
   0xf   :  { %s820_s16 = smov [#allocation8]   ;;  %s821_s18 = smov [#allocation2]  }
  0x10   :  { %s61_s17 = sshll.u32 %s820_s16, 4  ;;  %s24_s19 = sshll.u32 %s821_s18, 4  ;;  %s62_s17 = int_to_ptr.vmem [resolvable:$true] %s61_s17  ;;  %s25_s19 = int_to_ptr.vmem [resolvable:$true] %s24_s19 }
  0x11   :  { %s717_s20 = scalar_lea.vmem %s62_s17, 8192  ;;  %p722_p6 = scmp.lt.s32.totalorder %s62_s17, %s62_s17 }
  0x12   :  { %p718_p5 = scmp.ne.s32.totalorder %s62_s17, %s717_s20  ;;  %p723_p7 = scmp.lt.s32.totalorder %s717_s20, %s717_s20 }
  0x14   :  { %p724_p8 = por %p723_p7, %p722_p6 }
  0x16   :  { %p725_p9 = pnand %p724_p8, %p718_p5 }
  0x18   :  { %728 = shalt.err (!%p725_p9)
}
  0x19   :  { %67 = dma.hbm_to_vmem [thread:$0]  %s932_s5, 8192, %s62_s17, [#allocation9], %s818_s12, %s818_s12, %s819_s13  }
  0x1a   :  { %s737_s1 = scalar_lea.vmem %s25_s19, 128  ;;  %p742_p11 = scmp.lt.s32.totalorder %s25_s19, %s25_s19 }
  0x1b   :  { %p738_p10 = scmp.ne.s32.totalorder %s25_s19, %s737_s1  ;;  %p743_p12 = scmp.lt.s32.totalorder %s737_s1, %s737_s1 }
  0x1d   :  { %p744_p13 = por %p743_p12, %p742_p11 }
  0x1f   :  { %p745_p0 = pnand %p744_p13, %p738_p10 }
  0x21   :  { %748 = shalt.err (!%p745_p0)
}
  0x22   :  { %27 = dma.hbm_to_vmem [thread:$0]  %s927_s0, 128, %s25_s19, [#allocation3]  }
  0x23   :  { %s822_s25 = smov [#allocation7]   ;;  %s823_s27 = smov [#allocation10]  }
  0x24   :  { %s47_s26 = sshll.u32 %s822_s25, 4  ;;  %s75_s28 = sshll.u32 %s823_s27, 4  ;;  %s48_s26 = int_to_ptr.vmem [resolvable:$true] %s47_s26  ;;  %s76_s28 = int_to_ptr.vmem [resolvable:$true] %s75_s28 }
  0x25   :  { %s757_s29 = scalar_lea.vmem %s48_s26, 8192  ;;  %p762_p2 = scmp.lt.s32.totalorder %s48_s26, %s48_s26 }
  0x26   :  { %p758_p1 = scmp.ne.s32.totalorder %s48_s26, %s757_s29  ;;  %p763_p3 = scmp.lt.s32.totalorder %s757_s29, %s757_s29 }
  0x28   :  { %p764_p4 = por %p763_p3, %p762_p2 }
  0x2a   :  { %p765_p5 = pnand %p764_p4, %p758_p1 }
  0x2c   :  { %768 = shalt.err (!%p765_p5)
}
  0x2d   :  { %53 = dma.hbm_to_vmem [thread:$0]  %s930_s3, 8192, %s48_s26, [#allocation6], %s818_s12, %s818_s12, %s819_s13  }
  0x2e   :  { %s777_s0 = scalar_lea.vmem %s76_s28, 4096  ;;  %p782_p7 = scmp.lt.s32.totalorder %s76_s28, %s76_s28 }
  0x2f   :  { %p778_p6 = scmp.ne.s32.totalorder %s76_s28, %s777_s0  ;;  %p783_p8 = scmp.lt.s32.totalorder %s777_s0, %s777_s0 }
  0x31   :  { %p784_p9 = por %p783_p8, %p782_p7 }
  0x33   :  { %p785_p10 = pnand %p784_p9, %p778_p6 }
  0x35   :  { %788 = shalt.err (!%p785_p10)
}
  0x36   :  { %s824_s10 = smov 128   ;;  %s825_s11 = smov 8  }
  0x37   :  { %81 = dma.hbm_to_vmem [thread:$0]  %s934_s7, 4096, %s76_s28, [#allocation9], %s824_s10, %s824_s10, %s825_s11  }
  0x38   :  { %809 = dma.done.wait [#allocation3], 128  }
  0x39   :  { %810 = vsyncadd [#allocation3], 4294967168 }
  0x3a   :  { %811 = dma.done.wait [#allocation6], 12288  }
  0x3b   :  { %812 = vsyncadd [#allocation6], 4294955008 }
  0x3c   :  { %813 = dma.done.wait [#allocation9], 12288  }
  0x3d   :  { %814 = vsyncadd [#allocation9], 4294955008  ;;  %v826_v0 = vmov 0.0   ;;  %v131_v1 = vld [vmem:[#allocation5 + $0xf8] sm:$0xff]  ;;  %v130_v2 = vld [vmem:[#allocation5 + $0xf0] sm:$0xff]  ;;  %s827_s18 = smov [#allocation11]  }
  0x3e   :  { %208 = vmatprep.mubr.f32.mxu0 %v826_v0  ;;  %v129_v3 = vld [vmem:[#allocation5 + $0xe8] sm:$0xff]  ;;  %144 = vmatprep.subr.mxu0 %v131_v1  ;;  %v128_v4 = vld [vmem:[#allocation5 + $0xe0] sm:$0xff]  ;;  %v127_v5 = vld [vmem:[#allocation5 + $0xd8] sm:$0xff] }
  0x3f   :  { %145 = vmatpush1.msra.mxu0 %v130_v2  ;;  %v126_v6 = vld [vmem:[#allocation5 + $0xd0] sm:$0xff]  ;;  %v125_v7 = vld [vmem:[#allocation5 + $0xc8] sm:$0xff]  ;;  %v124_v8 = vld [vmem:[#allocation5 + $0xc0] sm:$0xff] }
  0x40   :  { %146 = vmatprep.subr.mxu0 %v129_v3  ;;  %v123_v9 = vld [vmem:[#allocation5 + $0xb8] sm:$0xff]  ;;  %v122_v10 = vld [vmem:[#allocation5 + $0xb0] sm:$0xff]  ;;  %v121_v11 = vld [vmem:[#allocation5 + $0xa8] sm:$0xff] }
  0x41   :  { %147 = vmatpush1.msra.mxu0 %v128_v4  ;;  %v120_v12 = vld [vmem:[#allocation5 + $0xa0] sm:$0xff]  ;;  %v119_v13 = vld [vmem:[#allocation5 + $0x98] sm:$0xff]  ;;  %v118_v14 = vld [vmem:[#allocation5 + $0x90] sm:$0xff] }
  0x42   :  { %148 = vmatprep.subr.mxu0 %v127_v5  ;;  %v248_v15 = vld [vmem:[#allocation7 + $0xf8] sm:$0xff]  ;;  %v247_v16 = vld [vmem:[#allocation7 + $0xf0] sm:$0xff]  ;;  %v246_v17 = vld [vmem:[#allocation7 + $0xe8] sm:$0xff] }
  0x43   :  { %149 = vmatpush1.msra.mxu0 %v126_v6  ;;  %v117_v18 = vld [vmem:[#allocation5 + $0x88] sm:$0xff]  ;;  %293 = vmatprep.subr.mxu1 %v248_v15  ;;  %v245_v19 = vld [vmem:[#allocation7 + $0xe0] sm:$0xff]  ;;  %v244_v21 = vld [vmem:[#allocation7 + $0xd8] sm:$0xff] }
  0x44   :  { %150 = vmatprep.subr.mxu0 %v125_v7  ;;  %v116_v20 = vld [vmem:[#allocation5 + $0x80] sm:$0xff]  ;;  %294 = vmatpush1.msra.mxu1 %v247_v16  ;;  %v115_v22 = vld [vmem:[#allocation5 + $0x78] sm:$0xff]  ;;  %v243_v23 = vld [vmem:[#allocation7 + $0xd0] sm:$0xff] }
  0x45   :  { %151 = vmatpush1.msra.mxu0 %v124_v8  ;;  %295 = vmatprep.subr.mxu1 %v246_v17  ;;  %v114_v24 = vld [vmem:[#allocation5 + $0x70] sm:$0xff]  ;;  %v242_v25 = vld [vmem:[#allocation7 + $0xc8] sm:$0xff]  ;;  %v241_v27 = vld [vmem:[#allocation7 + $0xc0] sm:$0xff] }
  0x46   :  { %152 = vmatprep.subr.mxu0 %v123_v9  ;;  %296 = vmatpush1.msra.mxu1 %v245_v19  ;;  %v113_v26 = vld [vmem:[#allocation5 + $0x68] sm:$0xff]  ;;  %v112_v28 = vld [vmem:[#allocation5 + $0x60] sm:$0xff]  ;;  %v240_v29 = vld [vmem:[#allocation7 + $0xb8] sm:$0xff] }
  0x47   :  { %153 = vmatpush1.msra.mxu0 %v122_v10  ;;  %297 = vmatprep.subr.mxu1 %v244_v21  ;;  %v111_v30 = vld [vmem:[#allocation5 + $0x58] sm:$0xff]  ;;  %v239_v31 = vld [vmem:[#allocation7 + $0xb0] sm:$0xff]  ;;  %v238_v33 = vld [vmem:[#allocation7 + $0xa8] sm:$0xff] }
  0x48   :  { %154 = vmatprep.subr.mxu0 %v121_v11  ;;  %298 = vmatpush1.msra.mxu1 %v243_v23  ;;  %v110_v32 = vld [vmem:[#allocation5 + $0x50] sm:$0xff]  ;;  %v109_v34 = vld [vmem:[#allocation5 + $0x48] sm:$0xff]  ;;  %v237_v35 = vld [vmem:[#allocation7 + $0xa0] sm:$0xff] }
  0x49   :  { %155 = vmatpush1.msra.mxu0 %v120_v12  ;;  %299 = vmatprep.subr.mxu1 %v242_v25  ;;  %v108_v36 = vld [vmem:[#allocation5 + $0x40] sm:$0xff]  ;;  %v236_v37 = vld [vmem:[#allocation7 + $0x98] sm:$0xff]  ;;  %v235_v39 = vld [vmem:[#allocation7 + $0x90] sm:$0xff] }
  0x4a   :  { %156 = vmatprep.subr.mxu0 %v119_v13  ;;  %300 = vmatpush1.msra.mxu1 %v241_v27  ;;  %v107_v38 = vld [vmem:[#allocation5 + $0x38] sm:$0xff]  ;;  %v106_v40 = vld [vmem:[#allocation5 + $0x30] sm:$0xff]  ;;  %v234_v41 = vld [vmem:[#allocation7 + $0x88] sm:$0xff] }
  0x4b   :  { %157 = vmatpush1.msra.mxu0 %v118_v14  ;;  %301 = vmatprep.subr.mxu1 %v240_v29  ;;  %v105_v42 = vld [vmem:[#allocation5 + $0x28] sm:$0xff]  ;;  %v233_v43 = vld [vmem:[#allocation7 + $0x80] sm:$0xff]  ;;  %v232_v45 = vld [vmem:[#allocation7 + $0x78] sm:$0xff] }
  0x4c   :  { %158 = vmatprep.subr.mxu0 %v117_v18  ;;  %302 = vmatpush1.msra.mxu1 %v239_v31  ;;  %v104_v44 = vld [vmem:[#allocation5 + $0x20] sm:$0xff]  ;;  %v103_v46 = vld [vmem:[#allocation5 + $0x18] sm:$0xff]  ;;  %v231_v47 = vld [vmem:[#allocation7 + $0x70] sm:$0xff] }
  0x4d   :  { %159 = vmatpush1.msra.mxu0 %v116_v20  ;;  %303 = vmatprep.subr.mxu1 %v238_v33  ;;  %v102_v48 = vld [vmem:[#allocation5 + $0x10] sm:$0xff]  ;;  %v230_v49 = vld [vmem:[#allocation7 + $0x68] sm:$0xff]  ;;  %v229_v51 = vld [vmem:[#allocation7 + $0x60] sm:$0xff] }
  0x4e   :  { %160 = vmatprep.subr.mxu0 %v115_v22  ;;  %304 = vmatpush1.msra.mxu1 %v237_v35  ;;  %v101_v50 = vld [vmem:[#allocation5 + $0x8] sm:$0xff]  ;;  %v100_v52 = vld [vmem:[#allocation5] sm:$0xff]  ;;  %v228_v53 = vld [vmem:[#allocation7 + $0x58] sm:$0xff] }
  0x4f   :  { %161 = vmatpush1.msra.mxu0 %v114_v24  ;;  %305 = vmatprep.subr.mxu1 %v236_v37  ;;  %v99_v54 = vld [vmem:[#allocation2] sm:$0xff]  ;;  %v227_v55 = vld [vmem:[#allocation7 + $0x50] sm:$0xff]  ;;  %v226_v56 = vld [vmem:[#allocation7 + $0x48] sm:$0xff] }
  0x50   :  { %162 = vmatprep.subr.mxu0 %v113_v26  ;;  %306 = vmatpush1.msra.mxu1 %v235_v39  ;;  %v225_v57 = vld [vmem:[#allocation7 + $0x40] sm:$0xff]  ;;  %v224_v58 = vld [vmem:[#allocation7 + $0x38] sm:$0xff]  ;;  %v223_v59 = vld [vmem:[#allocation7 + $0x30] sm:$0xff] }
  0x51   :  { %163 = vmatpush1.msra.mxu0 %v112_v28  ;;  %307 = vmatprep.subr.mxu1 %v234_v41  ;;  %v222_v60 = vld [vmem:[#allocation7 + $0x28] sm:$0xff]  ;;  %v221_v61 = vld [vmem:[#allocation7 + $0x20] sm:$0xff]  ;;  %v220_v62 = vld [vmem:[#allocation7 + $0x18] sm:$0xff] }
  0x52   :  { %164 = vmatprep.subr.mxu0 %v111_v30  ;;  %308 = vmatpush1.msra.mxu1 %v233_v43  ;;  %v219_v63 = vld [vmem:[#allocation7 + $0x10] sm:$0xff]  ;;  %v218_v0 = vld [vmem:[#allocation7 + $0x8] sm:$0xff]  ;;  %v217_v1 = vld [vmem:[#allocation7] sm:$0xff] }
  0x53   :  { %165 = vmatpush1.msra.mxu0 %v110_v32  ;;  %309 = vmatprep.subr.mxu1 %v232_v45  ;;  %v280_v2 = vld [vmem:[#allocation7 + $0x1f8] sm:$0xff]  ;;  %v279_v3 = vld [vmem:[#allocation7 + $0x1f0] sm:$0xff]  ;;  %v278_v4 = vld [vmem:[#allocation7 + $0x1e8] sm:$0xff] }
  0x54   :  { %166 = vmatprep.subr.mxu0 %v109_v34  ;;  %310 = vmatpush1.msra.mxu1 %v231_v47  ;;  %v277_v5 = vld [vmem:[#allocation7 + $0x1e0] sm:$0xff]  ;;  %v276_v6 = vld [vmem:[#allocation7 + $0x1d8] sm:$0xff]  ;;  %v275_v7 = vld [vmem:[#allocation7 + $0x1d0] sm:$0xff] }
  0x55   :  { %167 = vmatpush1.msra.mxu0 %v108_v36  ;;  %311 = vmatprep.subr.mxu1 %v230_v49  ;;  %v274_v8 = vld [vmem:[#allocation7 + $0x1c8] sm:$0xff]  ;;  %v273_v9 = vld [vmem:[#allocation7 + $0x1c0] sm:$0xff]  ;;  %v272_v10 = vld [vmem:[#allocation7 + $0x1b8] sm:$0xff] }
  0x56   :  { %168 = vmatprep.subr.mxu0 %v107_v38  ;;  %312 = vmatpush1.msra.mxu1 %v229_v51  ;;  %v271_v11 = vld [vmem:[#allocation7 + $0x1b0] sm:$0xff]  ;;  %v270_v12 = vld [vmem:[#allocation7 + $0x1a8] sm:$0xff]  ;;  %v269_v13 = vld [vmem:[#allocation7 + $0x1a0] sm:$0xff] }
  0x57   :  { %169 = vmatpush1.msra.mxu0 %v106_v40  ;;  %313 = vmatprep.subr.mxu1 %v228_v53  ;;  %v268_v14 = vld [vmem:[#allocation7 + $0x198] sm:$0xff]  ;;  %v267_v15 = vld [vmem:[#allocation7 + $0x190] sm:$0xff]  ;;  %v266_v16 = vld [vmem:[#allocation7 + $0x188] sm:$0xff] }
  0x58   :  { %170 = vmatprep.subr.mxu0 %v105_v42  ;;  %314 = vmatpush1.msra.mxu1 %v227_v55  ;;  %v265_v17 = vld [vmem:[#allocation7 + $0x180] sm:$0xff]  ;;  %v264_v18 = vld [vmem:[#allocation7 + $0x178] sm:$0xff]  ;;  %v263_v19 = vld [vmem:[#allocation7 + $0x170] sm:$0xff] }
  0x59   :  { %171 = vmatpush1.msra.mxu0 %v104_v44  ;;  %315 = vmatprep.subr.mxu1 %v226_v56  ;;  %v262_v20 = vld [vmem:[#allocation7 + $0x168] sm:$0xff]  ;;  %v261_v21 = vld [vmem:[#allocation7 + $0x160] sm:$0xff]  ;;  %v260_v22 = vld [vmem:[#allocation7 + $0x158] sm:$0xff] }
  0x5a   :  { %172 = vmatprep.subr.mxu0 %v103_v46  ;;  %316 = vmatpush1.msra.mxu1 %v225_v57  ;;  %v259_v23 = vld [vmem:[#allocation7 + $0x150] sm:$0xff]  ;;  %v258_v24 = vld [vmem:[#allocation7 + $0x148] sm:$0xff]  ;;  %v257_v25 = vld [vmem:[#allocation7 + $0x140] sm:$0xff] }
  0x5b   :  { %173 = vmatpush1.msra.mxu0 %v102_v48  ;;  %317 = vmatprep.subr.mxu1 %v224_v58  ;;  %v256_v26 = vld [vmem:[#allocation7 + $0x138] sm:$0xff]  ;;  %v255_v27 = vld [vmem:[#allocation7 + $0x130] sm:$0xff]  ;;  %v254_v28 = vld [vmem:[#allocation7 + $0x128] sm:$0xff] }
  0x5c   :  { %174 = vmatprep.subr.mxu0 %v101_v50  ;;  %318 = vmatpush1.msra.mxu1 %v223_v59  ;;  %v253_v29 = vld [vmem:[#allocation7 + $0x120] sm:$0xff]  ;;  %v252_v30 = vld [vmem:[#allocation7 + $0x118] sm:$0xff]  ;;  %v251_v31 = vld [vmem:[#allocation7 + $0x110] sm:$0xff] }
  0x5d   :  { %175 = vmatpush1.msra.mxu0 %v100_v52  ;;  %319 = vmatprep.subr.mxu1 %v222_v60  ;;  %v250_v32 = vld [vmem:[#allocation7 + $0x108] sm:$0xff]  ;;  %v249_v33 = vld [vmem:[#allocation7 + $0x100] sm:$0xff]  ;;  %v397_v34 = vld [vmem:[#allocation8 + $0xf8] sm:$0xff] }
  0x5e   :  { %209 = vmatmul.mubr.f32.vlgmr.msra.gmra.mxu0 %v99_v54  ;;  %320 = vmatpush1.msra.mxu1 %v221_v61  ;;  %v396_v35 = vld [vmem:[#allocation8 + $0xf0] sm:$0xff]  ;;  %v395_v36 = vld [vmem:[#allocation8 + $0xe8] sm:$0xff]  ;;  %v394_v37 = vld [vmem:[#allocation8 + $0xe0] sm:$0xff] }
  0x5f   :  { %321 = vmatprep.subr.mxu1 %v220_v62  ;;  %442 = vmatprep.subr.mxu0 %v397_v34  ;;  %v393_v38 = vld [vmem:[#allocation8 + $0xd8] sm:$0xff]  ;;  %v392_v39 = vld [vmem:[#allocation8 + $0xd0] sm:$0xff]  ;;  %v391_v40 = vld [vmem:[#allocation8 + $0xc8] sm:$0xff] }
  0x60   :  { %322 = vmatpush1.msra.mxu1 %v219_v63  ;;  %443 = vmatpush1.msra.mxu0 %v396_v35  ;;  %v390_v41 = vld [vmem:[#allocation8 + $0xc0] sm:$0xff]  ;;  %v389_v42 = vld [vmem:[#allocation8 + $0xb8] sm:$0xff]  ;;  %v388_v43 = vld [vmem:[#allocation8 + $0xb0] sm:$0xff] }
  0x61   :  { %323 = vmatprep.subr.mxu1 %v218_v0  ;;  %444 = vmatprep.subr.mxu0 %v395_v36  ;;  %v387_v44 = vld [vmem:[#allocation8 + $0xa8] sm:$0xff]  ;;  %v386_v45 = vld [vmem:[#allocation8 + $0xa0] sm:$0xff]  ;;  %v385_v46 = vld [vmem:[#allocation8 + $0x98] sm:$0xff] }
  0x62   :  { %324 = vmatpush1.msra.mxu1 %v217_v1  ;;  %445 = vmatpush1.msra.mxu0 %v394_v37  ;;  %v384_v47 = vld [vmem:[#allocation8 + $0x90] sm:$0xff]  ;;  %v383_v48 = vld [vmem:[#allocation8 + $0x88] sm:$0xff]  ;;  %v382_v49 = vld [vmem:[#allocation8 + $0x80] sm:$0xff] }
  0x63   :  { %325 = vmatprep.subr.mxu1 %v280_v2  ;;  %446 = vmatprep.subr.mxu0 %v393_v38  ;;  %v381_v50 = vld [vmem:[#allocation8 + $0x78] sm:$0xff]  ;;  %v380_v51 = vld [vmem:[#allocation8 + $0x70] sm:$0xff]  ;;  %v379_v52 = vld [vmem:[#allocation8 + $0x68] sm:$0xff] }
  0x64   :  { %326 = vmatpush2.msra.mxu1 %v279_v3  ;;  %447 = vmatpush1.msra.mxu0 %v392_v39  ;;  %v378_v53 = vld [vmem:[#allocation8 + $0x60] sm:$0xff]  ;;  %v377_v54 = vld [vmem:[#allocation8 + $0x58] sm:$0xff]  ;;  %v376_v55 = vld [vmem:[#allocation8 + $0x50] sm:$0xff] }
  0x65   :  { %327 = vmatprep.subr.mxu1 %v278_v4  ;;  %448 = vmatprep.subr.mxu0 %v391_v40  ;;  %v375_v56 = vld [vmem:[#allocation8 + $0x48] sm:$0xff]  ;;  %v374_v57 = vld [vmem:[#allocation8 + $0x40] sm:$0xff]  ;;  %v373_v58 = vld [vmem:[#allocation8 + $0x38] sm:$0xff] }
  0x66   :  { %328 = vmatpush2.msra.mxu1 %v277_v5  ;;  %449 = vmatpush1.msra.mxu0 %v390_v41  ;;  %v372_v59 = vld [vmem:[#allocation8 + $0x30] sm:$0xff]  ;;  %v371_v60 = vld [vmem:[#allocation8 + $0x28] sm:$0xff]  ;;  %v370_v61 = vld [vmem:[#allocation8 + $0x20] sm:$0xff] }
  0x67   :  { %329 = vmatprep.subr.mxu1 %v276_v6  ;;  %450 = vmatprep.subr.mxu0 %v389_v42  ;;  %v369_v62 = vld [vmem:[#allocation8 + $0x18] sm:$0xff]  ;;  %v368_v63 = vld [vmem:[#allocation8 + $0x10] sm:$0xff]  ;;  %v367_v0 = vld [vmem:[#allocation8 + $0x8] sm:$0xff] }
  0x68   :  { %330 = vmatpush2.msra.mxu1 %v275_v7  ;;  %451 = vmatpush1.msra.mxu0 %v388_v43  ;;  %v366_v1 = vld [vmem:[#allocation8] sm:$0xff]  ;;  %v429_v2 = vld [vmem:[#allocation8 + $0x1f8] sm:$0xff]  ;;  %v428_v3 = vld [vmem:[#allocation8 + $0x1f0] sm:$0xff] }
  0x69   :  { %331 = vmatprep.subr.mxu1 %v274_v8  ;;  %452 = vmatprep.subr.mxu0 %v387_v44  ;;  %v427_v4 = vld [vmem:[#allocation8 + $0x1e8] sm:$0xff]  ;;  %v426_v5 = vld [vmem:[#allocation8 + $0x1e0] sm:$0xff]  ;;  %v425_v6 = vld [vmem:[#allocation8 + $0x1d8] sm:$0xff] }
  0x6a   :  { %332 = vmatpush2.msra.mxu1 %v273_v9  ;;  %453 = vmatpush1.msra.mxu0 %v386_v45  ;;  %v424_v7 = vld [vmem:[#allocation8 + $0x1d0] sm:$0xff]  ;;  %v423_v8 = vld [vmem:[#allocation8 + $0x1c8] sm:$0xff]  ;;  %v422_v9 = vld [vmem:[#allocation8 + $0x1c0] sm:$0xff] }
  0x6b   :  { %333 = vmatprep.subr.mxu1 %v272_v10  ;;  %454 = vmatprep.subr.mxu0 %v385_v46  ;;  %v421_v10 = vld [vmem:[#allocation8 + $0x1b8] sm:$0xff]  ;;  %v404_v40 = vld [vmem:[#allocation8 + $0x130] sm:$0xff]  ;;  %v403_v41 = vld [vmem:[#allocation8 + $0x128] sm:$0xff] }
  0x6c   :  { %334 = vmatpush2.msra.mxu1 %v271_v11  ;;  %455 = vmatpush1.msra.mxu0 %v384_v47  ;;  %v420_v11 = vld [vmem:[#allocation8 + $0x1b0] sm:$0xff]  ;;  %v405_v39 = vld [vmem:[#allocation8 + $0x138] sm:$0xff]  ;;  %v402_v42 = vld [vmem:[#allocation8 + $0x120] sm:$0xff] }
  0x6d   :  { %335 = vmatprep.subr.mxu1 %v270_v12  ;;  %456 = vmatprep.subr.mxu0 %v383_v48  ;;  %v419_v12 = vld [vmem:[#allocation8 + $0x1a8] sm:$0xff]  ;;  %v401_v43 = vld [vmem:[#allocation8 + $0x118] sm:$0xff]  ;;  %v400_v44 = vld [vmem:[#allocation8 + $0x110] sm:$0xff] }
  0x6e   :  { %336 = vmatpush2.msra.mxu1 %v269_v13  ;;  %457 = vmatpush1.msra.mxu0 %v382_v49  ;;  %v418_v13 = vld [vmem:[#allocation8 + $0x1a0] sm:$0xff]  ;;  %v399_v45 = vld [vmem:[#allocation8 + $0x108] sm:$0xff]  ;;  %v546_v47 = vld [vmem:[#allocation10 + $0xf8] sm:$0xff] }
  0x6f   :  { %337 = vmatprep.subr.mxu1 %v268_v14  ;;  %458 = vmatprep.subr.mxu0 %v381_v50  ;;  %v417_v14 = vld [vmem:[#allocation8 + $0x198] sm:$0xff]  ;;  %v398_v46 = vld [vmem:[#allocation8 + $0x100] sm:$0xff]  ;;  %v545_v49 = vld [vmem:[#allocation10 + $0xf0] sm:$0xff] }
  0x70   :  { %338 = vmatpush2.msra.mxu1 %v267_v15  ;;  %459 = vmatpush1.msra.mxu0 %v380_v51  ;;  %v416_v15 = vld [vmem:[#allocation8 + $0x190] sm:$0xff]  ;;  %v530_v48 = vld [vmem:[#allocation10 + $0x78] sm:$0xff]  ;;  %v544_v51 = vld [vmem:[#allocation10 + $0xe8] sm:$0xff] }
  0x71   :  { %339 = vmatprep.subr.mxu1 %v266_v16  ;;  %460 = vmatprep.subr.mxu0 %v379_v52  ;;  %v415_v16 = vld [vmem:[#allocation8 + $0x188] sm:$0xff]  ;;  %v529_v50 = vld [vmem:[#allocation10 + $0x70] sm:$0xff] }
  0x72   :  { %340 = vmatpush2.msra.mxu1 %v265_v17  ;;  %461 = vmatpush1.msra.mxu0 %v378_v53  ;;  %v414_v17 = vld [vmem:[#allocation8 + $0x180] sm:$0xff]  ;;  %v528_v52 = vld [vmem:[#allocation10 + $0x68] sm:$0xff] }
  0x73   :  { %341 = vmatprep.subr.mxu1 %v264_v18  ;;  %462 = vmatprep.subr.mxu0 %v377_v54  ;;  %v413_v18 = vld [vmem:[#allocation8 + $0x178] sm:$0xff]  ;;  %v543_v53 = vld [vmem:[#allocation10 + $0xe0] sm:$0xff] }
  0x74   :  { %342 = vmatpush2.msra.mxu1 %v263_v19  ;;  %463 = vmatpush1.msra.mxu0 %v376_v55  ;;  %v412_v19 = vld [vmem:[#allocation8 + $0x170] sm:$0xff]  ;;  %v527_v54 = vld [vmem:[#allocation10 + $0x60] sm:$0xff]  ;;  %v542_v55 = vld [vmem:[#allocation10 + $0xd8] sm:$0xff] }
  0x75   :  { %343 = vmatprep.subr.mxu1 %v262_v20  ;;  %464 = vmatprep.subr.mxu0 %v375_v56  ;;  %v411_v20 = vld [vmem:[#allocation8 + $0x168] sm:$0xff]  ;;  %v526_v56 = vld [vmem:[#allocation10 + $0x58] sm:$0xff] }
  0x76   :  { %344 = vmatpush2.msra.mxu1 %v261_v21  ;;  %465 = vmatpush1.msra.mxu0 %v374_v57  ;;  %v410_v21 = vld [vmem:[#allocation8 + $0x160] sm:$0xff]  ;;  %v541_v57 = vld [vmem:[#allocation10 + $0xd0] sm:$0xff] }
  0x77   :  { %345 = vmatprep.subr.mxu1 %v260_v22  ;;  %466 = vmatprep.subr.mxu0 %v373_v58  ;;  %v409_v22 = vld [vmem:[#allocation8 + $0x158] sm:$0xff]  ;;  %v525_v58 = vld [vmem:[#allocation10 + $0x50] sm:$0xff] }
  0x78   :  { %346 = vmatpush2.msra.mxu1 %v259_v23  ;;  %467 = vmatpush1.msra.mxu0 %v372_v59  ;;  %v408_v23 = vld [vmem:[#allocation8 + $0x150] sm:$0xff]  ;;  %v540_v59 = vld [vmem:[#allocation10 + $0xc8] sm:$0xff] }
  0x79   :  { %347 = vmatprep.subr.mxu1 %v258_v24  ;;  %468 = vmatprep.subr.mxu0 %v371_v60  ;;  %v407_v24 = vld [vmem:[#allocation8 + $0x148] sm:$0xff] }
  0x7a   :  { %348 = vmatpush2.msra.mxu1 %v257_v25  ;;  %469 = vmatpush1.msra.mxu0 %v370_v61  ;;  %v406_v25 = vld [vmem:[#allocation8 + $0x140] sm:$0xff]  ;;  %v524_v60 = vld [vmem:[#allocation10 + $0x48] sm:$0xff] }
  0x7b   :  { %349 = vmatprep.subr.mxu1 %v256_v26  ;;  %470 = vmatprep.subr.mxu0 %v369_v62  ;;  %v134_v26 = vlaneseq  ;;  %v539_v61 = vld [vmem:[#allocation10 + $0xc0] sm:$0xff] }
  0x7c   :  { %350 = vmatpush2.msra.mxu1 %v255_v27  ;;  %471 = vmatpush1.msra.mxu0 %v368_v63  ;;  %v523_v62 = vld [vmem:[#allocation10 + $0x40] sm:$0xff]  ;;  %v538_v63 = vld [vmem:[#allocation10 + $0xb8] sm:$0xff] }
  0x7d   :  { %351 = vmatprep.subr.mxu1 %v254_v28  ;;  %472 = vmatprep.subr.mxu0 %v367_v0  ;;  %v135_v27 = vshrl.u32 %v134_v26, 7  ;;  %v522_v0 = vld [vmem:[#allocation10 + $0x38] sm:$0xff] }
  0x7e   :  { %352 = vmatpush2.msra.mxu1 %v253_v29  ;;  %473 = vmatpush1.msra.mxu0 %v366_v1  ;;  %v132_v29 = vld [vmem:[%s929_s2] sm:$0x3]  ;;  %v537_v1 = vld [vmem:[#allocation10 + $0xb0] sm:$0xff] }
  0x7f   :  { %353 = vmatprep.subr.mxu1 %v252_v30  ;;  %474 = vmatprep.subr.mxu0 %v429_v2  ;;  %v902_v28 = vsub.s32 0, %v135_v27  ;;  %v907_v30 = vsub.s32 1, %v135_v27  ;;  %v521_v2 = vld [vmem:[#allocation10 + $0x30] sm:$0xff] }
  0x80   :  { %354 = vmatpush2.msra.mxu1 %v251_v31  ;;  %475 = vmatpush2.msra.mxu0 %v428_v3  ;;  %v536_v3 = vld [vmem:[#allocation10 + $0xa8] sm:$0xff] }
  0x81   :  { %355 = vmatprep.subr.mxu1 %v250_v32  ;;  %476 = vmatprep.subr.mxu0 %v427_v4  ;;  %v137_v31 = vrot.slane %v132_v29, %v902_v28  ;;  %v141_v32 = vrot.slane %v132_v29, %v907_v30  ;;  %v520_v4 = vld [vmem:[#allocation10 + $0x28] sm:$0xff] }
  0x82   :  { %356 = vmatpush2.msra.mxu1 %v249_v33  ;;  %477 = vmatpush2.msra.mxu0 %v426_v5  ;;  %v535_v5 = vld [vmem:[#allocation10 + $0xa0] sm:$0xff] }
  0x83   :  { %478 = vmatprep.subr.mxu0 %v425_v6  ;;  %643 = vmatprep.subr.mxu1 %v546_v47  ;;  %v519_v6 = vld [vmem:[#allocation10 + $0x20] sm:$0xff] }
  0x84   :  { %479 = vmatpush2.msra.mxu0 %v424_v7  ;;  %v281_v7 = vld [vmem:[%s931_s4] sm:$0x3] }
  0x85   :  { %480 = vmatprep.subr.mxu0 %v423_v8  ;;  %v286_v8 = vrot.slane %v281_v7, %v902_v28 }
  0x86   :  { %481 = vmatpush2.msra.mxu0 %v422_v9  ;;  %v290_v9 = vrot.slane %v281_v7, %v907_v30 }
  0x87   :  { %482 = vmatprep.subr.mxu0 %v421_v10 }
  0x88   :  { %483 = vmatpush2.msra.mxu0 %v420_v11 }
  0x89   :  { %484 = vmatprep.subr.mxu0 %v419_v12 }
  0x8a   :  { %485 = vmatpush2.msra.mxu0 %v418_v13 }
  0x8b   :  { %486 = vmatprep.subr.mxu0 %v417_v14 }
  0x8c   :  { %487 = vmatpush2.msra.mxu0 %v416_v15 }
  0x8d   :  { %488 = vmatprep.subr.mxu0 %v415_v16  ;;  %v534_v16 = vld [vmem:[#allocation10 + $0x98] sm:$0xff] }
  0x8e   :  { %489 = vmatpush2.msra.mxu0 %v414_v17  ;;  %v518_v17 = vld [vmem:[#allocation10 + $0x18] sm:$0xff] }
  0x8f   :  { %490 = vmatprep.subr.mxu0 %v413_v18  ;;  %v533_v18 = vld [vmem:[#allocation10 + $0x90] sm:$0xff] }
  0x90   :  { %491 = vmatpush2.msra.mxu0 %v412_v19  ;;  %v517_v19 = vld [vmem:[#allocation10 + $0x10] sm:$0xff] }
  0x91   :  { %492 = vmatprep.subr.mxu0 %v411_v20  ;;  %v532_v20 = vld [vmem:[#allocation10 + $0x88] sm:$0xff] }
  0x92   :  { %493 = vmatpush2.msra.mxu0 %v410_v21  ;;  %v516_v21 = vld [vmem:[#allocation10 + $0x8] sm:$0xff] }
  0x93   :  { %494 = vmatprep.subr.mxu0 %v409_v22  ;;  %v531_v22 = vld [vmem:[#allocation10 + $0x80] sm:$0xff] }
  0x94   :  { %495 = vmatpush2.msra.mxu0 %v408_v23  ;;  %v515_v23 = vld [vmem:[#allocation10] sm:$0xff] }
  0x95   :  { %496 = vmatprep.subr.mxu0 %v407_v24  ;;  %v430_v24 = vld [vmem:[%s933_s6] sm:$0x3]  ;;  %s631_s6 = sshll.u32 %s827_s18, 4  ;;  %s632_s6 = int_to_ptr.vmem [resolvable:$true] %s631_s6 }
  0x96   :  { %497 = vmatpush2.msra.mxu0 %v406_v25  ;;  %v435_v25 = vrot.slane %v430_v24, %v902_v28  ;;  %v439_v26 = vrot.slane %v430_v24, %v907_v30  ;;  %s789_s19 = scalar_lea.vmem %s632_s6, 128  ;;  %p794_p12 = scmp.lt.s32.totalorder %s632_s6, %s632_s6 }
  0x97   :  { %498 = vmatprep.subr.mxu0 %v405_v39  ;;  %p790_p11 = scmp.ne.s32.totalorder %s632_s6, %s789_s19  ;;  %p795_p13 = scmp.lt.s32.totalorder %s789_s19, %s789_s19 }
  0x98   :  { %499 = vmatpush2.msra.mxu0 %v404_v40 }
  0x99   :  { %500 = vmatprep.subr.mxu0 %v403_v41  ;;  %p796_p0 = por %p795_p13, %p794_p12 }
  0x9a   :  { %501 = vmatpush2.msra.mxu0 %v402_v42 }
  0x9b   :  { %502 = vmatprep.subr.mxu0 %v401_v43  ;;  %p797_p1 = pnand %p796_p0, %p790_p11 }
  0x9c   :  { %503 = vmatpush2.msra.mxu0 %v400_v44 }
  0x9d   :  { %504 = vmatprep.subr.mxu0 %v399_v45 }
  0x9e   :  { %505 = vmatpush2.msra.mxu0 %v398_v46 }
 0x11e   :  { %v210_v33 = vpop.f32.mrf.mxu0 }
 0x11f   :  { %v211_v34 = vadd.f32 %v210_v33, %v137_v31 }
 0x120   :  { %v212_v35 = vpop.f32.mrf.mxu0 }
 0x121   :  { %v213_v36 = vadd.f32 %v212_v35, %v141_v32  ;;  %v215_v38 = vmax.f32 %v211_v34, 0.0 }
 0x123   :  { %v216_v37 = vmax.f32 %v213_v36, 0.0  ;;  %v642_v36 = vld [vmem:[%s935_s8] ss:$0 sm:$0xff] }
 0x125   :  { %357 = vmatprep.mubr.f32.mxu1 %v216_v37 }
 0x126   :  { %358 = vmatmul.mubr.f32.vlgmr.msra.gmra.mxu1 %v215_v38 }
 0x127   :  { %644 = vmatpush3.msra.mxu1 %v530_v48 }
 0x128   :  { %645 = vmatprep.subr.mxu1 %v545_v49 }
 0x129   :  { %646 = vmatpush3.msra.mxu1 %v529_v50 }
 0x12a   :  { %647 = vmatprep.subr.mxu1 %v544_v51 }
 0x12b   :  { %648 = vmatpush3.msra.mxu1 %v528_v52 }
 0x12c   :  { %649 = vmatprep.subr.mxu1 %v543_v53 }
 0x12d   :  { %650 = vmatpush3.msra.mxu1 %v527_v54 }
 0x12e   :  { %651 = vmatprep.subr.mxu1 %v542_v55 }
 0x12f   :  { %652 = vmatpush3.msra.mxu1 %v526_v56 }
 0x130   :  { %653 = vmatprep.subr.mxu1 %v541_v57 }
 0x131   :  { %654 = vmatpush3.msra.mxu1 %v525_v58 }
 0x132   :  { %655 = vmatprep.subr.mxu1 %v540_v59 }
 0x133   :  { %656 = vmatpush3.msra.mxu1 %v524_v60 }
 0x134   :  { %657 = vmatprep.subr.mxu1 %v539_v61 }
 0x135   :  { %658 = vmatpush3.msra.mxu1 %v523_v62 }
 0x136   :  { %659 = vmatprep.subr.mxu1 %v538_v63 }
 0x137   :  { %660 = vmatpush3.msra.mxu1 %v522_v0 }
 0x138   :  { %661 = vmatprep.subr.mxu1 %v537_v1 }
 0x139   :  { %662 = vmatpush3.msra.mxu1 %v521_v2 }
 0x13a   :  { %663 = vmatprep.subr.mxu1 %v536_v3 }
 0x13b   :  { %664 = vmatpush3.msra.mxu1 %v520_v4 }
 0x13c   :  { %665 = vmatprep.subr.mxu1 %v535_v5 }
 0x13d   :  { %666 = vmatpush3.msra.mxu1 %v519_v6 }
 0x13e   :  { %667 = vmatprep.subr.mxu1 %v534_v16 }
 0x13f   :  { %668 = vmatpush3.msra.mxu1 %v518_v17 }
 0x140   :  { %669 = vmatprep.subr.mxu1 %v533_v18 }
 0x141   :  { %670 = vmatpush3.msra.mxu1 %v517_v19 }
 0x142   :  { %671 = vmatprep.subr.mxu1 %v532_v20 }
 0x143   :  { %672 = vmatpush3.msra.mxu1 %v516_v21 }
 0x144   :  { %673 = vmatprep.subr.mxu1 %v531_v22 }
 0x145   :  { %674 = vmatpush3.msra.mxu1 %v515_v23 }
 0x1e6   :  { %v359_v10 = vpop.f32.mrf.mxu1 }
 0x1e7   :  { %v360_v11 = vadd.f32 %v359_v10, %v286_v8 }
 0x1e8   :  { %v361_v12 = vpop.f32.mrf.mxu1 }
 0x1e9   :  { %v362_v13 = vadd.f32 %v361_v12, %v290_v9  ;;  %v364_v15 = vmax.f32 %v360_v11, 0.0 }
 0x1eb   :  { %v365_v14 = vmax.f32 %v362_v13, 0.0 }
 0x1ed   :  { %506 = vmatprep.mubr.f32.mxu0 %v365_v14 }
 0x1ee   :  { %507 = vmatmul.mubr.f32.vlgmr.msra.gmra.mxu0 %v364_v15 }
 0x2ae   :  { %v508_v27 = vpop.f32.mrf.mxu0 }
 0x2af   :  { %v509_v29 = vadd.f32 %v508_v27, %v435_v25 }
 0x2b0   :  { %v510_v31 = vpop.f32.mrf.mxu0 }
 0x2b1   :  { %v511_v32 = vadd.f32 %v510_v31, %v439_v26  ;;  %v513_v34 = vmax.f32 %v509_v29, 0.0 }
 0x2b3   :  { %v514_v33 = vmax.f32 %v511_v32, 0.0 }
 0x2b5   :  { %618 = vmatprep.mubr.f32.mxu1 %v514_v33 }
 0x2b6   :  { %619 = vmatmul.mubr.f32.vlgmr.msra.gmra.mxu1 %v513_v34 }
 0x376   :  { %v675_v35 = vpop.f32.mrf.mxu1 }
 0x378   :  { %v676_v37 = vpop.f32.mrf.mxu1 }
 0x379   :  { %v677_v38 = vadd.f32 %v676_v37, %v675_v35 }
 0x37b   :  { %v621_v28 = vadd.f32 %v677_v38, %v642_v36 }
 0x37d   :  { %624 = vst [vmem:[#allocation11] sm:$0xff] %v621_v28 }
 0x37e   :  { %800 = shalt.err (!%p797_p1)
}
 0x37f   :  { %634 = dma.vmem_to_hbm [thread:$0]  %s632_s6, 128, %s936_s9, [#allocation4]  }
 0x380   :  { %815 = dma.done.wait [#allocation4], 128  }
 0x381   :  { %816 = vsyncadd [#allocation4], 4294967168 }
 0x382   :  { %638 = vsyncpa [#allocation3], 1 }
 0x383   :  { %639 = vsyncpa [#allocation6], 1 }
 0x384   :  { %640 = vsyncpa [#allocation9], 1 }
 0x385   :  { %641 = vsyncpa [#allocation4], 1 }

</bundles_post_ra>
